<compile_context>
chip_gen: v6e
topology: v6e:2x2x1
jax: 0.10.0
libtpu: 0.0.40
codegen_flags: <defaults>
</compile_context>

<pallas_src>
import functools

import jax
import jax.numpy as jnp
import numpy as np
from jax import lax
from jax.experimental import pallas as pl
from jax.experimental.pallas import tpu as pltpu

# Finite "minus infinity": keeps padded columns / accumulator init NaN-free
# even when an entire vocab shard is padding.
_NEG = -1e30


# ----------------------------------------------------------------------------
# Hardware detection (runs once, outside any jit trace).
# ----------------------------------------------------------------------------
@functools.lru_cache(maxsize=1)
def _tpu_hw_config():
    """Returns (vmem_capacity_bytes, num_tensorcores). Conservative fallbacks."""
    vmem_cap = None
    n_tc = None
    try:
        info = pltpu.get_tpu_info()
        v = getattr(info, "vmem_capacity_bytes", None)
        if isinstance(v, (int, np.integer)) and int(v) > 0:
            vmem_cap = int(v)
        for attr in ("num_tensorcores", "tensorcores_per_chip", "num_cores",
                     "core_count"):
            n = getattr(info, attr, None)
            if isinstance(n, (int, np.integer)) and 1 <= int(n) <= 8:
                n_tc = int(n)
                break
    except Exception:
        pass
    try:
        kind = jax.devices()[0].device_kind.lower()
    except Exception:
        kind = ""
    if vmem_cap is None:
        if ("v5" in kind) or ("v6" in kind):
            vmem_cap = 128 * 1024 * 1024      # v5e/v5p/v6e: 128 MiB VMEM
        elif "v7" in kind:
            vmem_cap = 64 * 1024 * 1024       # v7x: 64 MiB per TC
        else:
            vmem_cap = 32 * 1024 * 1024       # unknown / older part: be safe
    if n_tc is None:
        n_tc = 2 if "v7" in kind else 1       # v7x: 2 TensorCores per chip
    return vmem_cap, n_tc


def _vmem_budgets():
    vmem_cap, _ = _tpu_hw_config()
    vmem_limit = min(int(vmem_cap * 3) // 4, 96 * 1024 * 1024)
    tile_budget = int(vmem_limit * 3) // 5
    return vmem_limit, tile_budget


def _pick_vocab_tile(B, E, per_core_v, w_itemsize, scores_itemsize,
                     return_scores, tile_budget):
    """Largest multiple-of-128 divisor of per_core_v whose working set fits."""
    cands = [t for t in range(128, per_core_v + 1, 128) if per_core_v % t == 0]
    if not cands:
        return per_core_v
    e_lane = ((E + 127) // 128) * 128        # lane-padded E (VMEM footprint)
    b_sub = ((B + 7) // 8) * 8               # sublane-padded B
    tv = cands[0]
    for t in cands:
        cost = 2 * t * e_lane * w_itemsize   # double-buffered weight tile
        cost += 2 * b_sub * e_lane * 2       # bf16 x tile, double-buffered
        cost += 2 * 8 * t * 4                # bias tile (sublane-padded)
        cost += 3 * b_sub * 128 * 4          # (B,1) f32 scratch, lane-padded
        if return_scores:
            cost += 2 * b_sub * t * scores_itemsize   # scores output tile
        if cost <= tile_budget:
            tv = t
    return tv


# ----------------------------------------------------------------------------
# Kernel: fused scores = x @ W^T + b with online logsumexp / target gather.
# ----------------------------------------------------------------------------
def _make_kernel(emit_scores):
    def kernel(x_ref, w_ref, b_ref, tgt_ref, *rest):
        if emit_scores:
            scores_ref, lse_ref, tlog_ref, m_sc, l_sc, t_sc = rest
        else:
            lse_ref, tlog_ref, m_sc, l_sc, t_sc = rest

        i = pl.program_id(0)           # vocab shard ("parallel" -> TC split)
        j = pl.program_id(1)           # vocab tile within shard ("arbitrary")
        n_inner = pl.num_programs(1)

        @pl.when(j == 0)
        def _():
            m_sc[...] = jnp.full(m_sc.shape, _NEG, dtype=m_sc.dtype)
            l_sc[...] = jnp.zeros(l_sc.shape, dtype=l_sc.dtype)
            t_sc[...] = jnp.zeros(t_sc.shape, dtype=t_sc.dtype)

        # (B, E) bf16 x (TV, E) weights, contracting over E, f32 accumulation.
        # Weights are cast per-tile (no wrapper-side HBM pass over W) and fed
        # to the MXU directly from the (V, E) layout (no transpose anywhere).
        s = lax.dot_general(
            x_ref[...], w_ref[...].astype(jnp.bfloat16),
            dimension_numbers=(((1,), (1,)), ((), ())),
            preferred_element_type=jnp.float32) + b_ref[...]

        if emit_scores:
            scores_ref[...] = s.astype(scores_ref.dtype)

        tv = s.shape[1]
        col0 = (i * n_inner + j) * tv         # first vocab column of this tile
        col = lax.broadcasted_iota(jnp.int32, s.shape, 1)
        # Offset the (B,1) target instead of adding col0 to the full tile iota.
        mask = col == (tgt_ref[...] - col0)
        t_sc[...] += jnp.sum(jnp.where(mask, s, 0.0), axis=-1, keepdims=True)

        # Online softmax statistics (numerically stable cross-entropy).
        m_new = jnp.maximum(m_sc[...], jnp.max(s, axis=-1, keepdims=True))
        l_sc[...] = (l_sc[...] * jnp.exp(m_sc[...] - m_new)
                     + jnp.sum(jnp.exp(s - m_new), axis=-1, keepdims=True))
        m_sc[...] = m_new

        @pl.when(j == n_inner - 1)
        def _():
            lse_ref[...] = (m_sc[...] + jnp.log(l_sc[...])).reshape(lse_ref.shape)
            tlog_ref[...] = t_sc[...].reshape(tlog_ref.shape)

    return kernel


# ----------------------------------------------------------------------------
# Jitted implementation (config is static).
# ----------------------------------------------------------------------------
@functools.partial(
    jax.jit,
    static_argnames=("nc", "tv", "v_pad", "return_scores", "scores_dtype",
                     "vmem_limit"))
def _kmer2vec_fwd(target, context, embeddings, nce_weights, nce_biases, *,
                  nc, tv, v_pad, return_scores, scores_dtype, vmem_limit):
    B = target.shape[0]
    V, E = nce_weights.shape

    # Embedding lookups (glue): gather rows of the embedding table.
    target_embed = jnp.take(embeddings, target, axis=0)                  # (B, E)
    context_embed = jnp.take(embeddings, context.reshape(-1), axis=0)    # (B, E)

    x = context_embed.astype(jnp.bfloat16)      # (B, E) tiny -> cheap cast
    w = nce_weights                             # streamed in native dtype
    b = nce_biases.astype(jnp.float32)
    if v_pad > V:
        # Pad vocab to a tile-friendly size; padded bias = -1e30 so padded
        # columns never contribute to logsumexp or the target logit.
        w = jnp.pad(w, ((0, v_pad - V), (0, 0)))
        b = jnp.pad(b, (0, v_pad - V), constant_values=_NEG)
    b2 = b.reshape(1, v_pad)
    tgt2 = target.reshape(B, 1).astype(jnp.int32)   # int64 -> int32

    per_core = v_pad // nc
    n_inner = per_core // tv
    grid = (nc, n_inner)

    in_specs = [
        pl.BlockSpec((B, E), lambda i, j: (0, 0)),                  # context rows
        pl.BlockSpec((tv, E), lambda i, j: (i * n_inner + j, 0)),   # weight tile
        pl.BlockSpec((1, tv), lambda i, j: (0, i * n_inner + j)),   # bias tile
        pl.BlockSpec((B, 1), lambda i, j: (0, 0)),                  # target ids
    ]
    part_spec = pl.BlockSpec((1, B, 1), lambda i, j: (i, 0, 0))
    scratch = [pltpu.VMEM((B, 1), jnp.float32),   # running max
               pltpu.VMEM((B, 1), jnp.float32),   # running sum-exp
               pltpu.VMEM((B, 1), jnp.float32)]   # running target logit

    if return_scores:
        out_shape = (
            jax.ShapeDtypeStruct((B, v_pad), scores_dtype),
            jax.ShapeDtypeStruct((nc, B, 1), jnp.float32),
            jax.ShapeDtypeStruct((nc, B, 1), jnp.float32),
        )
        out_specs = [
            pl.BlockSpec((B, tv), lambda i, j: (0, i * n_inner + j)),
            part_spec, part_spec,
        ]
    else:
        out_shape = (
            jax.ShapeDtypeStruct((nc, B, 1), jnp.float32),
            jax.ShapeDtypeStruct((nc, B, 1), jnp.float32),
        )
        out_specs = [part_spec, part_spec]

    outs = pl.pallas_call(
        _make_kernel(return_scores),
        out_shape=out_shape,
        grid_spec=pltpu.PrefetchScalarGridSpec(
            num_scalar_prefetch=0,
            grid=grid,
            in_specs=in_specs,
            out_specs=out_specs,
            scratch_shapes=scratch,
        ),
        compiler_params=pltpu.CompilerParams(
            dimension_semantics=("parallel", "arbitrary"),
            vmem_limit_bytes=vmem_limit),
    )(x, w, b2, tgt2)

    if return_scores:
        scores, lse_p, tlog_p = outs
        if v_pad > V:
            scores = scores[:, :V]
    else:
        scores = None
        lse_p, tlog_p = outs

    # Combine per-shard partials (shards own disjoint vocab ranges): O(B) work.
    lse = jax.scipy.special.logsumexp(lse_p[:, :, 0], axis=0)    # (B,)
    tgt_logit = jnp.sum(tlog_p[:, :, 0], axis=0)                 # (B,)

    # CrossEntropyLoss (mean reduction): mean(logsumexp(scores) - scores[target])
    loss = jnp.mean(lse - tgt_logit)
    return scores, target_embed, loss


# ----------------------------------------------------------------------------
# Public wrapper: picks tiling / VMEM config from shapes + hardware.
# ----------------------------------------------------------------------------
def kmer2vec_forward(target, context, embeddings, nce_weights, nce_biases,
                     return_scores=True, scores_dtype=jnp.float32):
    """Pallas implementation of Kmer2Vec.forward.

    Returns (scores, target_embed, loss); scores is None when
    return_scores=False (loss-only fast path that skips the (B, V) HBM write).
    Pass scores_dtype=jnp.bfloat16 to halve the scores write stream.
    """
    B = int(target.shape[0])
    V, E = int(nce_weights.shape[0]), int(nce_weights.shape[1])

    vmem_cap, n_tc = _tpu_hw_config()
    vmem_limit, tile_budget = _vmem_budgets()

    nc = max(1, int(n_tc))
    unit = 128 * nc
    v_pad = ((V + unit - 1) // unit) * unit
    per_core = v_pad // nc

    w_itemsize = np.dtype(nce_weights.dtype).itemsize
    s_itemsize = np.dtype(scores_dtype).itemsize
    tv = _pick_vocab_tile(B, E, per_core, w_itemsize, s_itemsize,
                          bool(return_scores), tile_budget)

    return _kmer2vec_fwd(target, context, embeddings, nce_weights, nce_biases,
                         nc=nc, tv=tv, v_pad=v_pad,
                         return_scores=bool(return_scores),
                         scores_dtype=scores_dtype, vmem_limit=int(vmem_limit))


if __name__ == "__main__":
    # Small synthetic config consistent with the module (tiny vocab, small
    # embedding); V chosen as a multiple of 128 for lane-dense vocab tiles.
    B = 64
    E = 32
    V = 256

    key = jax.random.PRNGKey(0)
    k_emb, k_w, k_t, k_c = jax.random.split(key, 4)

    # Deterministic parameter init (nn.Embedding ~ N(0,1), nce_weights ~ randn,
    # nce_biases = zeros).
    embeddings = jax.random.normal(k_emb, (V, E), dtype=jnp.float32)
    nce_weights = jax.random.normal(k_w, (V, E), dtype=jnp.float32)
    nce_biases = jnp.zeros((V,), dtype=jnp.float32)

    # Inputs: target (B,), context (B, 1), integer kmer ids.
    target = jax.random.randint(k_t, (B,), 0, V, dtype=jnp.int32)
    context = jax.random.randint(k_c, (B, 1), 0, V, dtype=jnp.int32)

    # Full forward (scores + loss), matching the PyTorch module outputs.
    scores, target_embed, loss = kmer2vec_forward(
        target, context, embeddings, nce_weights, nce_biases)
    jax.block_until_ready((scores, target_embed, loss))

    # Loss-only fast path (skips the (B, V) scores write).
    _, _, loss_only = kmer2vec_forward(
        target, context, embeddings, nce_weights, nce_biases,
        return_scores=False)
    jax.block_until_ready(loss_only)

    # --- References ---
    # Exact-path reference: same bf16 inputs, f32 accumulation.
    ctx_bf16 = embeddings[context.reshape(-1)].astype(jnp.bfloat16)
    w_bf16 = nce_weights.astype(jnp.bfloat16)
    scores_ref = jnp.dot(ctx_bf16, w_bf16.T,
                         preferred_element_type=jnp.float32) + nce_biases
    logz = jax.scipy.special.logsumexp(scores_ref, axis=-1)
    loss_ref = jnp.mean(logz - scores_ref[jnp.arange(B), target])
    tgt_emb_ref = embeddings[target]

    # Full-precision (f32) reference for a coarse sanity check on the loss.
    scores_f32 = embeddings[context.reshape(-1)] @ nce_weights.T + nce_biases
    logz_f32 = jax.scipy.special.logsumexp(scores_f32, axis=-1)
    loss_f32 = jnp.mean(logz_f32 - scores_f32[jnp.arange(B), target])

    np.testing.assert_allclose(np.asarray(scores), np.asarray(scores_ref),
                               rtol=1e-4, atol=1e-4)
    np.testing.assert_allclose(np.asarray(target_embed), np.asarray(tgt_emb_ref),
                               rtol=1e-6, atol=1e-6)
    np.testing.assert_allclose(float(loss), float(loss_ref),
                               rtol=1e-4, atol=1e-4)
    np.testing.assert_allclose(float(loss_only), float(loss),
                               rtol=1e-5, atol=1e-5)
    # bf16 weight/activation streams vs full f32 math: coarse tolerance only.
    np.testing.assert_allclose(float(loss), float(loss_f32),
                               rtol=5e-2, atol=1e-1)

    print("KERNEL_OK")
</pallas_src>

<mosaic_0001>
module attributes {stable_mosaic.version = 11 : i64} {
  func.func @kernel(%arg0: i32, %arg1: i32, %arg2: memref<64x32xbf16, #tpu.memory_space<vmem>>, %arg3: memref<256x32xf32, #tpu.memory_space<vmem>>, %arg4: memref<1x256xf32, #tpu.memory_space<vmem>>, %arg5: memref<64x1xi32, #tpu.memory_space<vmem>>, %arg6: memref<64x256xf32, #tpu.memory_space<vmem>>, %arg7: memref<1x64x1xf32, #tpu.memory_space<vmem>>, %arg8: memref<1x64x1xf32, #tpu.memory_space<vmem>>, %arg9: memref<64x1xf32, #tpu.memory_space<vmem>>, %arg10: memref<64x1xf32, #tpu.memory_space<vmem>>, %arg11: memref<64x1xf32, #tpu.memory_space<vmem>>) attributes {dimension_semantics = [#tpu.dimension_semantics<parallel>, #tpu.dimension_semantics<arbitrary>], iteration_bounds = array<i64: 1, 1>, scalar_prefetch = 0 : i64, scratch_operands = 3 : i64, tpu.core_type = #tpu.core_type<tc>, window_params = [{pipeline_mode = #tpu.pipeline_mode<synchronous>, transform_indices = @transform_0, window_bounds = array<i64: 64, 32>}, {transform_indices = @transform_1, window_bounds = array<i64: 256, 32>}, {transform_indices = @transform_2, window_bounds = array<i64: 1, 256>}, {pipeline_mode = #tpu.pipeline_mode<synchronous>, transform_indices = @transform_3, window_bounds = array<i64: 64, 1>}, {transform_indices = @transform_4, window_bounds = array<i64: 64, 256>}, {transform_indices = @transform_5, window_bounds = array<i64: 1, 64, 1>}, {transform_indices = @transform_6, window_bounds = array<i64: 1, 64, 1>}]} {
    %c0_i32 = arith.constant 0 : i32
    %0 = arith.cmpi eq, %arg1, %c0_i32 : i32
    %1 = arith.extui %0 : i1 to i32
    %c0_i32_0 = arith.constant 0 : i32
    %2 = arith.cmpi ne, %1, %c0_i32_0 : i32
    scf.if %2 {
      %cst_30 = arith.constant -1.000000e+30 : f32
      %47 = vector.broadcast %cst_30 : f32 to vector<64x1xf32>
      %c0_31 = arith.constant 0 : index
      %c0_32 = arith.constant 0 : index
      %48 = vector.load %arg9[%c0_31, %c0_32] : memref<64x1xf32, #tpu.memory_space<vmem>>, vector<64x1xf32>
      tpu.vector_store %arg9[%c0_31, %c0_32], %47 {strides = array<i32>} : memref<64x1xf32, #tpu.memory_space<vmem>>, vector<64x1xf32>,
      %cst_33 = arith.constant 0.000000e+00 : f32
      %49 = vector.broadcast %cst_33 : f32 to vector<64x1xf32>
      %c0_34 = arith.constant 0 : index
      %c0_35 = arith.constant 0 : index
      %50 = vector.load %arg10[%c0_34, %c0_35] : memref<64x1xf32, #tpu.memory_space<vmem>>, vector<64x1xf32>
      tpu.vector_store %arg10[%c0_34, %c0_35], %49 {strides = array<i32>} : memref<64x1xf32, #tpu.memory_space<vmem>>, vector<64x1xf32>,
      %cst_36 = arith.constant 0.000000e+00 : f32
      %51 = vector.broadcast %cst_36 : f32 to vector<64x1xf32>
      %c0_37 = arith.constant 0 : index
      %c0_38 = arith.constant 0 : index
      %52 = vector.load %arg11[%c0_37, %c0_38] : memref<64x1xf32, #tpu.memory_space<vmem>>, vector<64x1xf32>
      tpu.vector_store %arg11[%c0_37, %c0_38], %51 {strides = array<i32>} : memref<64x1xf32, #tpu.memory_space<vmem>>, vector<64x1xf32>,
    } else {
    }
    %c0 = arith.constant 0 : index
    %c0_1 = arith.constant 0 : index
    %3 = vector.load %arg2[%c0, %c0_1] : memref<64x32xbf16, #tpu.memory_space<vmem>>, vector<64x32xbf16>
    %c0_2 = arith.constant 0 : index
    %c0_3 = arith.constant 0 : index
    %4 = vector.load %arg3[%c0_2, %c0_3] : memref<256x32xf32, #tpu.memory_space<vmem>>, vector<256x32xf32>
    %5 = arith.truncf %4 : vector<256x32xf32> to vector<256x32xbf16>
    %cst = arith.constant dense<0.000000e+00> : vector<64x256xf32>
    %6 = tpu.matmul %3, %5, %cst {dimension_numbers = #tpu.dot_dimension_numbers<[1], [1], [0], [0], [0, 0, 1, 0], [], []>} : vector<64x32xbf16>, vector<256x32xbf16>, vector<64x256xf32> -> vector<64x256xf32>
    %c0_4 = arith.constant 0 : index
    %c0_5 = arith.constant 0 : index
    %7 = vector.load %arg4[%c0_4, %c0_5] : memref<1x256xf32, #tpu.memory_space<vmem>>, vector<1x256xf32>
    %8 = vector.broadcast %7 : vector<1x256xf32> to vector<64x256xf32>
    %9 = arith.addf %6, %8 : vector<64x256xf32>
    %c0_6 = arith.constant 0 : index
    %c0_7 = arith.constant 0 : index
    %10 = vector.load %arg6[%c0_6, %c0_7] : memref<64x256xf32, #tpu.memory_space<vmem>>, vector<64x256xf32>
    tpu.vector_store %arg6[%c0_6, %c0_7], %9 {strides = array<i32>} : memref<64x256xf32, #tpu.memory_space<vmem>>, vector<64x256xf32>,
    %c1_i32 = arith.constant 1 : i32
    %11 = arith.muli %arg0, %c1_i32 : i32
    %12 = arith.addi %11, %arg1 : i32
    %c256_i32 = arith.constant 256 : i32
    %13 = arith.muli %12, %c256_i32 : i32
    %14 = tpu.iota {dimensions = array<i32: 1>} : vector<64x256xi32>
    %c0_8 = arith.constant 0 : index
    %c0_9 = arith.constant 0 : index
    %15 = vector.load %arg5[%c0_8, %c0_9] : memref<64x1xi32, #tpu.memory_space<vmem>>, vector<64x1xi32>
    %16 = vector.broadcast %13 : i32 to vector<64x1xi32>
    %17 = arith.subi %15, %16 : vector<64x1xi32>
    %18 = vector.broadcast %17 : vector<64x1xi32> to vector<64x256xi32>
    %19 = arith.cmpi eq, %14, %18 : vector<64x256xi32>
    %c0_10 = arith.constant 0 : index
    %c0_11 = arith.constant 0 : index
    %20 = vector.load %arg11[%c0_10, %c0_11] : memref<64x1xf32, #tpu.memory_space<vmem>>, vector<64x1xf32>
    %cst_12 = arith.constant 0.000000e+00 : f32
    %21 = vector.broadcast %cst_12 : f32 to vector<64x256xf32>
    %22 = arith.select %19, %9, %21 : vector<64x256xi1>, vector<64x256xf32>
    %cst_13 = arith.constant dense<0.000000e+00> : vector<64xf32>
    %23 = vector.multi_reduction <add>, %22, %cst_13 [1] : vector<64x256xf32> to vector<64xf32>
    %24 = vector.shape_cast %23 : vector<64xf32> to vector<64x1xf32>
    %25 = arith.addf %20, %24 : vector<64x1xf32>
    %c0_14 = arith.constant 0 : index
    %c0_15 = arith.constant 0 : index
    %26 = vector.load %arg11[%c0_14, %c0_15] : memref<64x1xf32, #tpu.memory_space<vmem>>, vector<64x1xf32>
    tpu.vector_store %arg11[%c0_14, %c0_15], %25 {strides = array<i32>} : memref<64x1xf32, #tpu.memory_space<vmem>>, vector<64x1xf32>,
    %c0_16 = arith.constant 0 : index
    %c0_17 = arith.constant 0 : index
    %27 = vector.load %arg9[%c0_16, %c0_17] : memref<64x1xf32, #tpu.memory_space<vmem>>, vector<64x1xf32>
    %cst_18 = arith.constant dense<0xFF800000> : vector<64xf32>
    %28 = vector.multi_reduction <maximumf>, %9, %cst_18 [1] : vector<64x256xf32> to vector<64xf32>
    %29 = vector.shape_cast %28 : vector<64xf32> to vector<64x1xf32>
    %30 = arith.maximumf %27, %29 : vector<64x1xf32>
    %c0_19 = arith.constant 0 : index
    %c0_20 = arith.constant 0 : index
    %31 = vector.load %arg10[%c0_19, %c0_20] : memref<64x1xf32, #tpu.memory_space<vmem>>, vector<64x1xf32>
    %c0_21 = arith.constant 0 : index
    %c0_22 = arith.constant 0 : index
    %32 = vector.load %arg9[%c0_21, %c0_22] : memref<64x1xf32, #tpu.memory_space<vmem>>, vector<64x1xf32>
    %33 = arith.subf %32, %30 : vector<64x1xf32>
    %34 = math.exp %33 : vector<64x1xf32>
    %35 = arith.mulf %31, %34 : vector<64x1xf32>
    %36 = vector.broadcast %30 : vector<64x1xf32> to vector<64x256xf32>
    %37 = arith.subf %9, %36 : vector<64x256xf32>
    %38 = math.exp %37 : vector<64x256xf32>
    %cst_23 = arith.constant dense<0.000000e+00> : vector<64xf32>
    %39 = vector.multi_reduction <add>, %38, %cst_23 [1] : vector<64x256xf32> to vector<64xf32>
    %40 = vector.shape_cast %39 : vector<64xf32> to vector<64x1xf32>
    %41 = arith.addf %35, %40 : vector<64x1xf32>
    %c0_24 = arith.constant 0 : index
    %c0_25 = arith.constant 0 : index
    %42 = vector.load %arg10[%c0_24, %c0_25] : memref<64x1xf32, #tpu.memory_space<vmem>>, vector<64x1xf32>
    tpu.vector_store %arg10[%c0_24, %c0_25], %41 {strides = array<i32>} : memref<64x1xf32, #tpu.memory_space<vmem>>, vector<64x1xf32>,
    %c0_26 = arith.constant 0 : index
    %c0_27 = arith.constant 0 : index
    %43 = vector.load %arg9[%c0_26, %c0_27] : memref<64x1xf32, #tpu.memory_space<vmem>>, vector<64x1xf32>
    tpu.vector_store %arg9[%c0_26, %c0_27], %30 {strides = array<i32>} : memref<64x1xf32, #tpu.memory_space<vmem>>, vector<64x1xf32>,
    %c0_i32_28 = arith.constant 0 : i32
    %44 = arith.cmpi eq, %arg1, %c0_i32_28 : i32
    %45 = arith.extui %44 : i1 to i32
    %c0_i32_29 = arith.constant 0 : i32
    %46 = arith.cmpi ne, %45, %c0_i32_29 : i32
    scf.if %46 {
      %c0_30 = arith.constant 0 : index
      %c0_31 = arith.constant 0 : index
      %47 = vector.load %arg9[%c0_30, %c0_31] : memref<64x1xf32, #tpu.memory_space<vmem>>, vector<64x1xf32>
      %c0_32 = arith.constant 0 : index
      %c0_33 = arith.constant 0 : index
      %48 = vector.load %arg10[%c0_32, %c0_33] : memref<64x1xf32, #tpu.memory_space<vmem>>, vector<64x1xf32>
      %49 = math.log %48 : vector<64x1xf32>
      %50 = arith.addf %47, %49 : vector<64x1xf32>
      %51 = vector.shape_cast %50 : vector<64x1xf32> to vector<1x64x1xf32>
      %c0_34 = arith.constant 0 : index
      %c0_35 = arith.constant 0 : index
      %c0_36 = arith.constant 0 : index
      %52 = vector.load %arg7[%c0_34, %c0_35, %c0_36] : memref<1x64x1xf32, #tpu.memory_space<vmem>>, vector<1x64x1xf32>
      tpu.vector_store %arg7[%c0_34, %c0_35, %c0_36], %51 {strides = array<i32>} : memref<1x64x1xf32, #tpu.memory_space<vmem>>, vector<1x64x1xf32>,
      %c0_37 = arith.constant 0 : index
      %c0_38 = arith.constant 0 : index
      %53 = vector.load %arg11[%c0_37, %c0_38] : memref<64x1xf32, #tpu.memory_space<vmem>>, vector<64x1xf32>
      %54 = vector.shape_cast %53 : vector<64x1xf32> to vector<1x64x1xf32>
      %c0_39 = arith.constant 0 : index
      %c0_40 = arith.constant 0 : index
      %c0_41 = arith.constant 0 : index
      %55 = vector.load %arg8[%c0_39, %c0_40, %c0_41] : memref<1x64x1xf32, #tpu.memory_space<vmem>>, vector<1x64x1xf32>
      tpu.vector_store %arg8[%c0_39, %c0_40, %c0_41], %54 {strides = array<i32>} : memref<1x64x1xf32, #tpu.memory_space<vmem>>, vector<1x64x1xf32>,
    } else {
    }
    return
  }
  func.func @transform_0(%arg0: i32, %arg1: i32) -> (i32, i32) {
    %c0_i32 = arith.constant 0 : i32
    %c0_i32_0 = arith.constant 0 : i32
    %c0_i32_1 = arith.constant 0 : i32
    return %c0_i32, %c0_i32_0 : i32, i32
  }
  func.func @transform_1(%arg0: i32, %arg1: i32) -> (i32, i32) {
    %c1_i32 = arith.constant 1 : i32
    %0 = arith.muli %arg0, %c1_i32 : i32
    %1 = arith.addi %0, %arg1 : i32
    %c0_i32 = arith.constant 0 : i32
    %c0_i32_0 = arith.constant 0 : i32
    return %1, %c0_i32 : i32, i32
  }
  func.func @transform_2(%arg0: i32, %arg1: i32) -> (i32, i32) {
    %c1_i32 = arith.constant 1 : i32
    %0 = arith.muli %arg0, %c1_i32 : i32
    %1 = arith.addi %0, %arg1 : i32
    %c0_i32 = arith.constant 0 : i32
    %c0_i32_0 = arith.constant 0 : i32
    return %c0_i32, %1 : i32, i32
  }
  func.func @transform_3(%arg0: i32, %arg1: i32) -> (i32, i32) {
    %c0_i32 = arith.constant 0 : i32
    %c0_i32_0 = arith.constant 0 : i32
    %c0_i32_1 = arith.constant 0 : i32
    return %c0_i32, %c0_i32_0 : i32, i32
  }
  func.func @transform_4(%arg0: i32, %arg1: i32) -> (i32, i32) {
    %c1_i32 = arith.constant 1 : i32
    %0 = arith.muli %arg0, %c1_i32 : i32
    %1 = arith.addi %0, %arg1 : i32
    %c0_i32 = arith.constant 0 : i32
    %c0_i32_0 = arith.constant 0 : i32
    return %c0_i32, %1 : i32, i32
  }
  func.func @transform_5(%arg0: i32, %arg1: i32) -> (i32, i32, i32) {
    %c0_i32 = arith.constant 0 : i32
    %c0_i32_0 = arith.constant 0 : i32
    %c0_i32_1 = arith.constant 0 : i32
    return %arg0, %c0_i32, %c0_i32_0 : i32, i32, i32
  }
  func.func @transform_6(%arg0: i32, %arg1: i32) -> (i32, i32, i32) {
    %c0_i32 = arith.constant 0 : i32
    %c0_i32_0 = arith.constant 0 : i32
    %c0_i32_1 = arith.constant 0 : i32
    return %arg0, %c0_i32, %c0_i32_0 : i32, i32, i32
  }
}

</mosaic_0001>

<bundles_post_ra>
// kernel: _kmer2vec_fwd.1
= control target key start
LH: loop header
LB: loop body
LE: loop exit
PB: predicated region body
PF: predicated region fallthrough
CT: control target
= control target key end

     0   :  { %vm182_vm0 = vcmask 261120   ;;  %s1497_s0 = inlined_call_operand.vmem [shape: bf16[64,32], index: 0, kind: input, shape index: {}]   ;;  %s1498_s1 = inlined_call_operand.vmem [shape: f32[256,32], index: 1, kind: input, shape index: {}]   ;;  %s1499_s2 = inlined_call_operand.vmem [shape: f32[1,256], index: 2, kind: input, shape index: {}]   ;;  %s1500_s3 = inlined_call_operand.vmem [shape: s32[64,1], index: 3, kind: input, shape index: {}]   ;;  %s1501_s4 = inlined_call_operand.hbm [shape: f32[64,256], index: 4, kind: output, shape index: {0}]   ;;  %s1502_s5 = inlined_call_operand.vmem [shape: f32[1,64,1], index: 5, kind: output, shape index: {1}]   ;;  %s1503_s6 = inlined_call_operand.vmem [shape: f32[1,64,1], index: 6, kind: output, shape index: {2}]  }
   0x1   :  { %v132_v0 = vld [vmem:[%s1498_s1 + $0xf0] sm:$0xff]  ;;  %v133_v1 = vld [vmem:[%s1498_s1 + $0xf8] sm:$0xff]  ;;  %v130_v5 = vld [vmem:[%s1498_s1 + $0xe0] sm:$0xff] }
   0x2   :  { %v116_v2 = vld [vmem:[%s1498_s1 + $0x70] sm:$0xff]  ;;  %v149_v3 = vpack.c.bf16 %v133_v1, %v132_v0  ;;  %v117_v4 = vld [vmem:[%s1498_s1 + $0x78] sm:$0xff]  ;;  %v131_v6 = vld [vmem:[%s1498_s1 + $0xe8] sm:$0xff] }
   0x3   :  { %v141_v7 = vpack.c.bf16 %v117_v4, %v116_v2  ;;  %v148_v8 = vpack.c.bf16 %v131_v6, %v130_v5  ;;  %v114_v9 = vld [vmem:[%s1498_s1 + $0x60] sm:$0xff]  ;;  %v115_v10 = vld [vmem:[%s1498_s1 + $0x68] sm:$0xff]  ;;  %v128_v13 = vld [vmem:[%s1498_s1 + $0xd0] sm:$0xff] }
   0x4   :  { %827 = vmatprep.subr.msk.bf16.mxu0 %vm182_vm0, %v149_v3  ;;  %828 = vmatprep.subr.msk.bf16.mxu1 %vm182_vm0, %v149_v3  ;;  %v140_v12 = vpack.c.bf16 %v115_v10, %v114_v9  ;;  %v129_v14 = vld [vmem:[%s1498_s1 + $0xd8] sm:$0xff]  ;;  %v112_v17 = vld [vmem:[%s1498_s1 + $0x50] sm:$0xff]  ;;  %v1027_v19 = vld [vmem:[%s1497_s0] sm:$0xff]  }
   0x5   :  { %v217_v11 = vsel %vm182_vm0, %v141_v7, 0  ;;  %v147_v16 = vpack.c.bf16 %v129_v14, %v128_v13  ;;  %v113_v18 = vld [vmem:[%s1498_s1 + $0x58] sm:$0xff]  ;;  %v1032_v20 = vld [vmem:[%s1497_s0 + $0x10] sm:$0xff]   ;;  %v126_v22 = vld [vmem:[%s1498_s1 + $0xc0] sm:$0xff]  ;;  %803 = vmatprep.mubr.msk.bf16.mxu0 %vm182_vm0, %v1027_v19 }
   0x6   :  { %788 = vmatpush3.bf16.xpose.msra.mxu0 %v217_v11  ;;  %819 = vmatpush3.bf16.xpose.msra.mxu1 %v217_v11  ;;  %v214_v15 = vsel %vm182_vm0, %v140_v12, 0  ;;  %v139_v21 = vpack.c.bf16 %v113_v18, %v112_v17  ;;  %v127_v23 = vld [vmem:[%s1498_s1 + $0xc8] sm:$0xff] }
   0x7   :  { %829 = vmatprep.subr.msk.bf16.mxu0 %vm182_vm0, %v148_v8  ;;  %830 = vmatprep.subr.msk.bf16.mxu1 %vm182_vm0, %v148_v8 }
   0x8   :  { %807 = vmatprep.mubr.msk.bf16.mxu1 %vm182_vm0, %v1032_v20 }
   0xe   :  { %790 = vmatpush3.bf16.xpose.msra.mxu0 %v214_v15  ;;  %820 = vmatpush3.bf16.xpose.msra.mxu1 %v214_v15 }
   0xf   :  { %831 = vmatprep.subr.msk.bf16.mxu0 %vm182_vm0, %v147_v16  ;;  %832 = vmatprep.subr.msk.bf16.mxu1 %vm182_vm0, %v147_v16 }
  0x10   :  { %12 = vsyncpa [#allocation6], 0  ;;  %v211_v24 = vsel %vm182_vm0, %v139_v21, 0  ;;  %v146_v25 = vpack.c.bf16 %v127_v23, %v126_v22  ;;  %v110_v26 = vld [vmem:[%s1498_s1 + $0x40] sm:$0xff]  ;;  %v111_v27 = vld [vmem:[%s1498_s1 + $0x48] sm:$0xff]  ;;  %v152_v60 = vlaneseq  ;;  %vm69_vm1 = vcmask 7168  }
  0x11   :  { %v138_v28 = vpack.c.bf16 %v111_v27, %v110_v26  ;;  %v124_v29 = vld [vmem:[%s1498_s1 + $0xb0] sm:$0xff]  ;;  %v125_v30 = vld [vmem:[%s1498_s1 + $0xb8] sm:$0xff]  ;;  %v122_v36 = vld [vmem:[%s1498_s1 + $0xa0] sm:$0xff]  ;;  %v941_v26 = vmov -1e+30  }
  0x12   :  { %v145_v32 = vpack.c.bf16 %v125_v30, %v124_v29  ;;  %v108_v33 = vld [vmem:[%s1498_s1 + $0x30] sm:$0xff]  ;;  %v109_v34 = vld [vmem:[%s1498_s1 + $0x38] sm:$0xff]  ;;  %v123_v37 = vld [vmem:[%s1498_s1 + $0xa8] sm:$0xff]  ;;  %v153_v61 = vshrl.u32 %v152_v60, 7  ;;  %70 = vst.msk [vmem:[#allocation2] sm:$0xff] %vm69_vm1, %v941_v26 }
  0x13   :  { %v208_v31 = vsel %vm182_vm0, %v138_v28, 0  ;;  %v137_v35 = vpack.c.bf16 %v109_v34, %v108_v33  ;;  %v144_v39 = vpack.c.bf16 %v123_v37, %v122_v36  ;;  %v106_v40 = vld [vmem:[%s1498_s1 + $0x20] sm:$0xff]  ;;  %v107_v41 = vld [vmem:[%s1498_s1 + $0x28] sm:$0xff]  ;;  %v120_v43 = vld [vmem:[%s1498_s1 + $0x90] sm:$0xff]  ;;  %71 = vst.msk [vmem:[#allocation2 + $0x8] sm:$0xff] %vm69_vm1, %v941_v26 }
  0x14   :  { %v136_v42 = vpack.c.bf16 %v107_v41, %v106_v40  ;;  %v121_v44 = vld [vmem:[%s1498_s1 + $0x98] sm:$0xff]  ;;  %v104_v47 = vld [vmem:[%s1498_s1 + $0x10] sm:$0xff]  ;;  %v118_v50 = vld [vmem:[%s1498_s1 + $0x80] sm:$0xff]  ;;  %v154_v62 = vsub.s32 0, %v153_v61  ;;  %v158_v0 = vsub.s32 1, %v153_v61  ;;  %72 = vst.msk [vmem:[#allocation2 + $0x10] sm:$0xff] %vm69_vm1, %v941_v26 }
  0x15   :  { %v205_v38 = vsel %vm182_vm0, %v137_v35, 0  ;;  %v143_v46 = vpack.c.bf16 %v121_v44, %v120_v43  ;;  %v105_v48 = vld [vmem:[%s1498_s1 + $0x18] sm:$0xff]  ;;  %v119_v51 = vld [vmem:[%s1498_s1 + $0x88] sm:$0xff]  ;;  %v102_v54 = vld [vmem:[%s1498_s1] sm:$0xff]  ;;  %73 = vst.msk [vmem:[#allocation2 + $0x18] sm:$0xff] %vm69_vm1, %v941_v26  ;;  %v942_v43 = vmov 0  }
  0x16   :  { %792 = vmatpush3.bf16.xpose.msra.mxu0 %v211_v24  ;;  %821 = vmatpush3.bf16.xpose.msra.mxu1 %v211_v24  ;;  %v202_v45 = vsel %vm182_vm0, %v136_v42, 0  ;;  %v135_v49 = vpack.c.bf16 %v105_v48, %v104_v47  ;;  %v142_v53 = vpack.c.bf16 %v119_v51, %v118_v50  ;;  %v103_v55 = vld [vmem:[%s1498_s1 + $0x8] sm:$0xff]  ;;  %v854_v59 = vld [vmem:[%s1497_s0 + $0x18] sm:$0xff]   ;;  %v150_v63 = vld [vmem:[%s1499_s2] sm:$0x3]  ;;  %74 = vst.msk [vmem:[#allocation2 + $0x20] sm:$0xff] %vm69_vm1, %v941_v26 }
  0x17   :  { %833 = vmatprep.subr.msk.bf16.mxu0 %vm182_vm0, %v146_v25  ;;  %834 = vmatprep.subr.msk.bf16.mxu1 %vm182_vm0, %v146_v25  ;;  %v134_v56 = vpack.c.bf16 %v103_v55, %v102_v54  ;;  %v853_v58 = vld [vmem:[%s1497_s0 + $0x8] sm:$0xff]   ;;  %v155_v1 = vrot.slane %v150_v63, %v154_v62  ;;  %v1134_v2 = vrot.slane %v150_v63, %v158_v0  ;;  %v340_v0 = vld [vmem:[%s1500_s3 + $0x18] sm:$0xff] }
  0x18   :  { %v199_v52 = vsel %vm182_vm0, %v135_v49, 0  ;;  %75 = vst.msk [vmem:[#allocation2 + $0x28] sm:$0xff] %vm69_vm1, %v941_v26  ;;  %76 = vst.msk [vmem:[#allocation2 + $0x30] sm:$0xff] %vm69_vm1, %v941_v26  ;;  %849 = vset.pattern.permute.xlu0 %v942_v43  ;;  %850 = vset.pattern.permute.xlu1 %v942_v43  ;;  %v338_v54 = vld [vmem:[%s1500_s3 + $0x8] sm:$0xff] }
  0x19   :  { %v196_v57 = vsel %vm182_vm0, %v134_v56, 0  ;;  %77 = vst.msk [vmem:[#allocation2 + $0x38] sm:$0xff] %vm69_vm1, %v941_v26  ;;  %v344_v26 = vld [vmem:[%s1500_s3 + $0x38] sm:$0xff] }
  0x1d   :  { %v1239_v50 = vld [vmem:[#allocation2 + $0x20] sm:$0xff] }
  0x1e   :  { %794 = vmatpush3.bf16.xpose.msra.mxu0 %v208_v31  ;;  %822 = vmatpush3.bf16.xpose.msra.mxu1 %v208_v31 }
  0x1f   :  { %835 = vmatprep.subr.msk.bf16.mxu0 %vm182_vm0, %v145_v32  ;;  %836 = vmatprep.subr.msk.bf16.mxu1 %vm182_vm0, %v145_v32  ;;  %v1237_v49 = vld [vmem:[#allocation2 + $0x28] sm:$0xff] }
  0x26   :  { %796 = vmatpush3.bf16.xpose.msra.mxu0 %v205_v38  ;;  %823 = vmatpush3.bf16.xpose.msra.mxu1 %v205_v38 }
  0x27   :  { %837 = vmatprep.subr.msk.bf16.mxu0 %vm182_vm0, %v144_v39  ;;  %838 = vmatprep.subr.msk.bf16.mxu1 %vm182_vm0, %v144_v39 }
  0x2e   :  { %798 = vmatpush3.bf16.xpose.msra.mxu0 %v202_v45  ;;  %824 = vmatpush3.bf16.xpose.msra.mxu1 %v202_v45  ;;  %v943_v45 = vmov 0.0  }
  0x2f   :  { %839 = vmatprep.subr.msk.bf16.mxu0 %vm182_vm0, %v143_v46  ;;  %840 = vmatprep.subr.msk.bf16.mxu1 %vm182_vm0, %v143_v46  ;;  %78 = vst.msk [vmem:[#allocation3] sm:$0xff] %vm69_vm1, %v943_v45  ;;  %79 = vst.msk [vmem:[#allocation3 + $0x8] sm:$0xff] %vm69_vm1, %v943_v45  ;;  %v1232_v46 = vld [vmem:[#allocation2] sm:$0xff] }
  0x30   :  { %80 = vst.msk [vmem:[#allocation3 + $0x10] sm:$0xff] %vm69_vm1, %v943_v45  ;;  %81 = vst.msk [vmem:[#allocation3 + $0x18] sm:$0xff] %vm69_vm1, %v943_v45 }
  0x31   :  { %82 = vst.msk [vmem:[#allocation3 + $0x20] sm:$0xff] %vm69_vm1, %v943_v45  ;;  %83 = vst.msk [vmem:[#allocation3 + $0x28] sm:$0xff] %vm69_vm1, %v943_v45 }
  0x32   :  { %84 = vst.msk [vmem:[#allocation3 + $0x30] sm:$0xff] %vm69_vm1, %v943_v45  ;;  %85 = vst.msk [vmem:[#allocation3 + $0x38] sm:$0xff] %vm69_vm1, %v943_v45 }
  0x33   :  { %86 = vst.msk [vmem:[#allocation4] sm:$0xff] %vm69_vm1, %v943_v45  ;;  %87 = vst.msk [vmem:[#allocation4 + $0x8] sm:$0xff] %vm69_vm1, %v943_v45 }
  0x34   :  { %88 = vst.msk [vmem:[#allocation4 + $0x10] sm:$0xff] %vm69_vm1, %v943_v45  ;;  %89 = vst.msk [vmem:[#allocation4 + $0x18] sm:$0xff] %vm69_vm1, %v943_v45 }
  0x35   :  { %90 = vst.msk [vmem:[#allocation4 + $0x20] sm:$0xff] %vm69_vm1, %v943_v45  ;;  %91 = vst.msk [vmem:[#allocation4 + $0x28] sm:$0xff] %vm69_vm1, %v943_v45 }
  0x36   :  { %800 = vmatpush3.bf16.xpose.msra.mxu0 %v199_v52  ;;  %825 = vmatpush3.bf16.xpose.msra.mxu1 %v199_v52  ;;  %92 = vst.msk [vmem:[#allocation4 + $0x30] sm:$0xff] %vm69_vm1, %v943_v45  ;;  %93 = vst.msk [vmem:[#allocation4 + $0x38] sm:$0xff] %vm69_vm1, %v943_v45 }
  0x37   :  { %841 = vmatprep.subr.msk.bf16.mxu0 %vm182_vm0, %v142_v53  ;;  %842 = vmatprep.subr.msk.bf16.mxu1 %vm182_vm0, %v142_v53 }
  0x3e   :  { %802 = vmatpush3.bf16.xpose.msra.mxu0 %v196_v57  ;;  %826 = vmatpush3.bf16.xpose.msra.mxu1 %v196_v57  ;;  %v1255_v57 = vld [vmem:[#allocation2 + $0x8] sm:$0xff] }
  0x45   :  { %804 = vmatmul.mubr.msk.bf16.vlgmr.msra.gmra.mxu0 %vm182_vm0, %v1027_v19  ;;  %808 = vmatmul.mubr.msk.bf16.vlgmr.msra.gmra.mxu1 %vm182_vm0, %v1032_v20 }
  0x46   :  { %805 = vmatprep.mubr.msk.bf16.mxu0 %vm182_vm0, %v853_v58  ;;  %809 = vmatprep.mubr.msk.bf16.mxu1 %vm182_vm0, %v854_v59 }
  0x4d   :  { %806 = vmatmul.mubr.msk.bf16.gmra.mxu0 %vm182_vm0, %v853_v58  ;;  %810 = vmatmul.mubr.msk.bf16.gmra.mxu1 %vm182_vm0, %v854_v59  ;;  %v1257_v58 = vld [vmem:[#allocation2 + $0x10] sm:$0xff] }
 0x105   :  { %v277_v3 = vpop.f32.mrf.mxu0  ;;  %v297_v4 = vpop.f32.mrf.mxu1 }
 0x106   :  { %v1136_v5 = vadd.f32 %v277_v3, %v155_v1  ;;  %v1138_v6 = vadd.f32 %v297_v4, %v155_v1  ;;  %v1277_v3 = vld [vmem:[#allocation2 + $0x18] sm:$0xff]  ;;  %v1279_v4 = vld [vmem:[#allocation2 + $0x30] sm:$0xff] }
 0x107   :  { %v279_v7 = vpop.f32.mrf.mxu0  ;;  %v299_v8 = vpop.f32.mrf.mxu1 }
 0x108   :  { %316 = vst [vmem:[#allocation5] sm:$0xff] %v1136_v5  ;;  %324 = vst [vmem:[#allocation5 + $0x40] sm:$0xff] %v1138_v6  ;;  %v1143_v9 = vadd.f32 %v279_v7, %v1134_v2  ;;  %v1146_v10 = vadd.f32 %v299_v8, %v1134_v2 }
 0x109   :  { %v281_v11 = vpop.f32.mrf.mxu0  ;;  %v301_v12 = vpop.f32.mrf.mxu1 }
 0x10a   :  { %317 = vst [vmem:[#allocation5 + $0x8] sm:$0xff] %v1143_v9  ;;  %325 = vst [vmem:[#allocation5 + $0x48] sm:$0xff] %v1146_v10  ;;  %v1150_v13 = vadd.f32 %v281_v11, %v155_v1  ;;  %v1152_v14 = vadd.f32 %v301_v12, %v155_v1  ;;  %v467_v15 = vmax.f32 %v1136_v5, %v1143_v9  ;;  %v342_v12 = vld [vmem:[%s1500_s3 + $0x28] sm:$0xff] }
 0x10b   :  { %v283_v16 = vpop.f32.mrf.mxu0  ;;  %v303_v17 = vpop.f32.mrf.mxu1  ;;  %v479_v24 = vmax.f32 %v1138_v6, %v1146_v10 }
 0x10c   :  { %318 = vst [vmem:[#allocation5 + $0x10] sm:$0xff] %v1150_v13  ;;  %326 = vst [vmem:[#allocation5 + $0x50] sm:$0xff] %v1152_v14  ;;  %v1159_v18 = vadd.f32 %v283_v16, %v1134_v2  ;;  %v1162_v19 = vadd.f32 %v303_v17, %v1134_v2  ;;  %468 = vmax.xlane.f32.xlu0 %v467_v15 }
 0x10d   :  { %v287_v20 = vpop.f32.mrf.mxu0  ;;  %v307_v21 = vpop.f32.mrf.mxu1 }
 0x10e   :  { %319 = vst [vmem:[#allocation5 + $0x18] sm:$0xff] %v1159_v18  ;;  %327 = vst [vmem:[#allocation5 + $0x58] sm:$0xff] %v1162_v19  ;;  %v1166_v22 = vadd.f32 %v287_v20, %v155_v1  ;;  %v482_v23 = vmax.f32 %v1152_v14, %v1162_v19  ;;  %v1172_v25 = vadd.f32 %v307_v21, %v155_v1  ;;  %v1299_v20 = vld [vmem:[#allocation2 + $0x38] sm:$0xff] }
 0x10f   :  { %v289_v27 = vpop.f32.mrf.mxu0  ;;  %v309_v28 = vpop.f32.mrf.mxu1  ;;  %v470_v34 = vmax.f32 %v1150_v13, %v1159_v18 }
 0x110   :  { %320 = vst [vmem:[#allocation5 + $0x20] sm:$0xff] %v1166_v22  ;;  %483 = vmax.xlane.f32.xlu1 %v482_v23  ;;  %480 = vmax.xlane.f32.xlu0 %v479_v24  ;;  %v1184_v29 = vadd.f32 %v289_v27, %v1134_v2  ;;  %328 = vst [vmem:[#allocation5 + $0x60] sm:$0xff] %v1172_v25  ;;  %v1188_v30 = vadd.f32 %v309_v28, %v1134_v2 }
 0x111   :  { %v291_v31 = vpop.f32.mrf.mxu0  ;;  %v311_v32 = vpop.f32.mrf.mxu1 }
 0x112   :  { %321 = vst [vmem:[#allocation5 + $0x28] sm:$0xff] %v1184_v29  ;;  %v1191_v33 = vadd.f32 %v291_v31, %v155_v1  ;;  %329 = vst [vmem:[#allocation5 + $0x68] sm:$0xff] %v1188_v30  ;;  %v473_v35 = vmax.f32 %v1166_v22, %v1184_v29  ;;  %v1198_v36 = vadd.f32 %v311_v32, %v155_v1  ;;  %v337_v31 = vld [vmem:[%s1500_s3] sm:$0xff]  ;;  %v339_v32 = vld [vmem:[%s1500_s3 + $0x10] sm:$0xff] }
 0x113   :  { %v293_v37 = vpop.f32.mrf.mxu0  ;;  %v313_v38 = vpop.f32.mrf.mxu1  ;;  %v485_v41 = vmax.f32 %v1172_v25, %v1188_v30 }
 0x114   :  { %322 = vst [vmem:[#allocation5 + $0x30] sm:$0xff] %v1191_v33  ;;  %471 = vmax.xlane.f32.xlu0 %v470_v34  ;;  %v1202_v39 = vadd.f32 %v293_v37, %v1134_v2  ;;  %474 = vmax.xlane.f32.xlu1 %v473_v35  ;;  %330 = vst [vmem:[#allocation5 + $0x70] sm:$0xff] %v1198_v36  ;;  %v1206_v40 = vadd.f32 %v313_v38, %v1134_v2  ;;  %v341_v34 = vld [vmem:[%s1500_s3 + $0x20] sm:$0xff]  ;;  %v343_v35 = vld [vmem:[%s1500_s3 + $0x30] sm:$0xff]  ;;  %s944_s3 = smov [#allocation5]  }
 0x115   :  { %s751_s12 = sshll.u32 %s944_s3, 4  ;;  %s752_s12 = int_to_ptr.vmem [resolvable:$true] %s751_s12 }
 0x116   :  { %323 = vst [vmem:[#allocation5 + $0x38] sm:$0xff] %v1202_v39  ;;  %331 = vst [vmem:[#allocation5 + $0x78] sm:$0xff] %v1206_v40  ;;  %v476_v42 = vmax.f32 %v1191_v33, %v1202_v39  ;;  %v488_v44 = vmax.f32 %v1198_v36, %v1206_v40  ;;  %s919_s13 = scalar_lea.vmem %s752_s12, 2048  ;;  %p924_p1 = scmp.lt.s32.totalorder %s752_s12, %s752_s12 }
 0x117   :  { %p920_p0 = scmp.ne.s32.totalorder %s752_s12, %s919_s13  ;;  %p925_p2 = scmp.lt.s32.totalorder %s919_s13, %s919_s13 }
 0x118   :  { %477 = vmax.xlane.f32.xlu1 %v476_v42  ;;  %486 = vmax.xlane.f32.xlu0 %v485_v41 }
 0x119   :  { %p926_p3 = por %p925_p2, %p924_p1 }
 0x11b   :  { %p927_p4 = pnand %p926_p3, %p920_p0 }
 0x11c   :  { %489 = vmax.xlane.f32.xlu1 %v488_v44 }
 0x195   :  { %v469_v47 = vpop.xlane.xlu0 %468 }
 0x196   :  { %v1235_v48 = vmax.f32 %v1232_v46, %v469_v47 }
 0x198   :  { %v507_v51 = vsub.f32 %v1232_v46, %v1235_v48  ;;  %667 = vst.msk [vmem:[#allocation2] sm:$0xff] %vm69_vm1, %v1235_v48  ;;  %541 = vperm.xlu0 %849, %v1235_v48  }
 0x199   :  { %v484_v52 = vpop.xlane.xlu1 %483  ;;  %v481_v53 = vpop.xlane.xlu0 %480 }
 0x19a   :  { %v1250_v55 = vmax.f32 %v1237_v49, %v484_v52  ;;  %v1253_v56 = vmax.f32 %v1239_v50, %v481_v53 }
 0x19c   :  { %v512_v59 = vsub.f32 %v1237_v49, %v1250_v55  ;;  %672 = vst.msk [vmem:[#allocation2 + $0x28] sm:$0xff] %vm69_vm1, %v1250_v55  ;;  %v511_v61 = vsub.f32 %v1239_v50, %v1253_v56  ;;  %671 = vst.msk [vmem:[#allocation2 + $0x20] sm:$0xff] %vm69_vm1, %v1253_v56  ;;  %561 = vperm.xlu1 %850, %v1253_v56   ;;  %358 = vperm.xlu0 %849, %v338_v54  }
 0x19d   :  { %v472_v62 = vpop.xlane.xlu0 %471  ;;  %v475_v63 = vpop.xlane.xlu1 %474 }
 0x19e   :  { %v1272_v1 = vmax.f32 %v1255_v57, %v472_v62  ;;  %v1275_v2 = vmax.f32 %v1257_v58, %v475_v63 }
 0x1a0   :  { %v508_v7 = vsub.f32 %v1255_v57, %v1272_v1  ;;  %668 = vst.msk [vmem:[#allocation2 + $0x8] sm:$0xff] %vm69_vm1, %v1272_v1  ;;  %v509_v8 = vsub.f32 %v1257_v58, %v1275_v2  ;;  %669 = vst.msk [vmem:[#allocation2 + $0x10] sm:$0xff] %vm69_vm1, %v1275_v2  ;;  %546 = vperm.xlu1 %850, %v1272_v1   ;;  %364 = vperm.xlu0 %849, %v340_v0  }
 0x1a1   :  { %v478_v11 = vpop.xlane.xlu1 %477  ;;  %v487_v15 = vpop.xlane.xlu0 %486 }
 0x1a2   :  { %v1294_v16 = vmax.f32 %v1277_v3, %v478_v11  ;;  %v1297_v17 = vmax.f32 %v1279_v4, %v487_v15 }
 0x1a4   :  { %v510_v21 = vsub.f32 %v1277_v3, %v1294_v16  ;;  %670 = vst.msk [vmem:[#allocation2 + $0x18] sm:$0xff] %vm69_vm1, %v1294_v16  ;;  %566 = vperm.xlu1 %850, %v1250_v55   ;;  %370 = vperm.xlu0 %849, %v342_v12   ;;  %v513_v23 = vsub.f32 %v1279_v4, %v1297_v17  ;;  %673 = vst.msk [vmem:[#allocation2 + $0x30] sm:$0xff] %vm69_vm1, %v1297_v17 }
 0x1a5   :  { %v490_v24 = vpop.xlane.xlu1 %489 }
 0x1a6   :  { %v1314_v27 = vmax.f32 %v1299_v20, %v490_v24 }
 0x1a8   :  { %v514_v28 = vsub.f32 %v1299_v20, %v1314_v27  ;;  %674 = vst.msk [vmem:[#allocation2 + $0x38] sm:$0xff] %vm69_vm1, %v1314_v27  ;;  %551 = vperm.xlu1 %850, %v1275_v2   ;;  %376 = vperm.xlu0 %849, %v344_v26  }
 0x1ac   :  { %571 = vperm.xlu1 %850, %v1297_v17  }
 0x1b0   :  { %556 = vperm.xlu1 %850, %v1294_v16  }
 0x1b4   :  { %576 = vperm.xlu1 %850, %v1314_v27  }
 0x1b8   :  { %355 = vperm.xlu1 %850, %v337_v31  }
 0x1bc   :  { %361 = vperm.xlu1 %850, %v339_v32  }
 0x1c0   :  { %367 = vperm.xlu1 %850, %v341_v34  }
 0x1c4   :  { %373 = vperm.xlu1 %850, %v343_v35  }
 0x213   :  { %v542_v37 = vpop.permute.xlu0 %541 }
 0x214   :  { %v579_v38 = vsub.f32 %v1136_v5, %v542_v37  ;;  %v580_v41 = vsub.f32 %v1143_v9, %v542_v37 }
 0x216   :  { %v595_v42 = vmul.f32 1.442695, %v579_v38  ;;  %v597_v43 = vmul.f32 1.442695, %v580_v41 }
 0x217   :  { %v562_v44 = vpop.permute.xlu1 %561 }
 0x218   :  { %855 = vpow2.f32 %v595_v42  ;;  %v587_v45 = vsub.f32 %v1138_v6, %v562_v44  ;;  %v588_v47 = vsub.f32 %v1146_v10, %v562_v44 }
 0x219   :  { %857 = vpow2.f32 %v597_v43 }
 0x21a   :  { %v611_v52 = vmul.f32 1.442695, %v587_v45  ;;  %v613_v53 = vmul.f32 1.442695, %v588_v47 }
 0x21b   :  { %v547_v54 = vpop.permute.xlu1 %546 }
 0x21c   :  { %859 = vpow2.f32 %v611_v52  ;;  %v581_v62 = vsub.f32 %v1150_v13, %v547_v54  ;;  %v582_v63 = vsub.f32 %v1159_v18, %v547_v54 }
 0x21d   :  { %861 = vpow2.f32 %v613_v53 }
 0x21e   :  { %v599_v0 = vmul.f32 1.442695, %v581_v62  ;;  %v601_v11 = vmul.f32 1.442695, %v582_v63 }
 0x21f   :  { %v567_v12 = vpop.permute.xlu1 %566 }
 0x220   :  { %863 = vpow2.f32 %v599_v0  ;;  %v589_v15 = vsub.f32 %v1152_v14, %v567_v12  ;;  %v590_v24 = vsub.f32 %v1162_v19, %v567_v12 }
 0x221   :  { %865 = vpow2.f32 %v601_v11 }
 0x222   :  { %v615_v26 = vmul.f32 1.442695, %v589_v15  ;;  %v617_v31 = vmul.f32 1.442695, %v590_v24 }
 0x223   :  { %v552_v32 = vpop.permute.xlu1 %551 }
 0x224   :  { %867 = vpow2.f32 %v615_v26  ;;  %v583_v34 = vsub.f32 %v1166_v22, %v552_v32  ;;  %v584_v35 = vsub.f32 %v1184_v29, %v552_v32 }
 0x225   :  { %v856_v37 = vpop.eup %855  ;;  %869 = vpow2.f32 %v617_v31 }
 0x226   :  { %v858_v38 = vpop.eup %857  ;;  %v603_v41 = vmul.f32 1.442695, %v583_v34  ;;  %v605_v42 = vmul.f32 1.442695, %v584_v35 }
 0x227   :  { %v572_v43 = vpop.permute.xlu1 %571  ;;  %v627_v44 = vadd.f32 %v858_v38, %v856_v37 }
 0x228   :  { %871 = vpow2.f32 %v603_v41  ;;  %v591_v45 = vsub.f32 %v1172_v25, %v572_v43  ;;  %v592_v47 = vsub.f32 %v1188_v30, %v572_v43 }
 0x229   :  { %v860_v52 = vpop.eup %859  ;;  %873 = vpow2.f32 %v605_v42  ;;  %628 = vadd.xlane.f32.xlu1 %v627_v44  ;;  %v1353_v44 = vand.u32 127, %v152_v60 }
 0x22a   :  { %v862_v53 = vpop.eup %861  ;;  %v619_v54 = vmul.f32 1.442695, %v591_v45  ;;  %v621_v62 = vmul.f32 1.442695, %v592_v47 }
 0x22b   :  { %v557_v63 = vpop.permute.xlu1 %556  ;;  %v639_v0 = vadd.f32 %v862_v53, %v860_v52 }
 0x22c   :  { %875 = vpow2.f32 %v619_v54  ;;  %v585_v11 = vsub.f32 %v1191_v33, %v557_v63  ;;  %v586_v12 = vsub.f32 %v1202_v39, %v557_v63  ;;  %v1356_v54 = vadd.s32 128, %v1353_v44 }
 0x22d   :  { %v864_v15 = vpop.eup %863  ;;  %877 = vpow2.f32 %v621_v62  ;;  %640 = vadd.xlane.f32.xlu0 %v639_v0  ;;  %v359_v0 = vpop.permute.xlu0 %358 }
 0x22e   :  { %v866_v24 = vpop.eup %865  ;;  %v607_v26 = vmul.f32 1.442695, %v585_v11  ;;  %v609_v31 = vmul.f32 1.442695, %v586_v12  ;;  %vm380_vm6 = vcmp.eq.s32.totalorder %v1353_v44, %v359_v0  ;;  %vm381_vm7 = vcmp.eq.s32.totalorder %v1356_v54, %v359_v0 }
 0x22f   :  { %v577_v32 = vpop.permute.xlu1 %576  ;;  %v630_v34 = vadd.f32 %v866_v24, %v864_v15 }
 0x230   :  { %879 = vpow2.f32 %v607_v26  ;;  %v593_v35 = vsub.f32 %v1198_v36, %v577_v32  ;;  %v594_v37 = vsub.f32 %v1206_v40, %v577_v32 }
 0x231   :  { %v868_v38 = vpop.eup %867  ;;  %881 = vpow2.f32 %v609_v31  ;;  %631 = vadd.xlane.f32.xlu0 %v630_v34  ;;  %v365_v34 = vpop.permute.xlu0 %364 }
 0x232   :  { %v870_v41 = vpop.eup %869  ;;  %v623_v42 = vmul.f32 1.442695, %v593_v35  ;;  %v625_v43 = vmul.f32 1.442695, %v594_v37  ;;  %vm384_vm10 = vcmp.eq.s32.totalorder %v1353_v44, %v365_v34  ;;  %vm385_vm11 = vcmp.eq.s32.totalorder %v1356_v54, %v365_v34 }
 0x233   :  { %v356_v45 = vpop.permute.xlu1 %355  ;;  %v642_v47 = vadd.f32 %v870_v41, %v868_v38 }
 0x234   :  { %883 = vpow2.f32 %v623_v42  ;;  %vm378_vm2 = vcmp.eq.s32.totalorder %v1353_v44, %v356_v45  ;;  %vm379_vm3 = vcmp.eq.s32.totalorder %v1356_v54, %v356_v45 }
 0x235   :  { %v872_v52 = vpop.eup %871  ;;  %885 = vpow2.f32 %v625_v43  ;;  %643 = vadd.xlane.f32.xlu1 %v642_v47  ;;  %v402_v24 = vsel %vm378_vm2, %v1136_v5, 0.0  ;;  %v403_v26 = vsel %vm379_vm3, %v1143_v9, 0.0  ;;  %v404_v47 = vsel %vm380_vm6, %v1150_v13, 0.0 }
 0x236   :  { %v874_v53 = vpop.eup %873  ;;  %v418_v35 = vadd.f32 %v403_v26, %v402_v24 }
 0x237   :  { %v362_v62 = vpop.permute.xlu1 %361  ;;  %v633_v63 = vadd.f32 %v874_v53, %v872_v52  ;;  %v405_v53 = vsel %vm381_vm7, %v1159_v18, 0.0 }
 0x238   :  { %vm382_vm4 = vcmp.eq.s32.totalorder %v1353_v44, %v362_v62  ;;  %vm383_vm5 = vcmp.eq.s32.totalorder %v1356_v54, %v362_v62 }
 0x239   :  { %v876_v11 = vpop.eup %875  ;;  %634 = vadd.xlane.f32.xlu0 %v633_v63  ;;  %v406_v38 = vsel %vm382_vm4, %v1166_v22, 0.0  ;;  %v407_v41 = vsel %vm383_vm5, %v1184_v29, 0.0  ;;  %v371_v22 = vpop.permute.xlu0 %370  ;;  %v421_v63 = vadd.f32 %v405_v53, %v404_v47 }
 0x23a   :  { %v878_v60 = vpop.eup %877  ;;  %v424_v43 = vadd.f32 %v407_v41, %v406_v38  ;;  %vm388_vm14 = vcmp.eq.s32.totalorder %v1353_v44, %v371_v22  ;;  %vm389_vm15 = vcmp.eq.s32.totalorder %v1356_v54, %v371_v22 }
 0x23b   :  { %v645_v12 = vadd.f32 %v878_v60, %v876_v11  ;;  %v368_v15 = vpop.permute.xlu1 %367 }
 0x23c   :  { %vm386_vm8 = vcmp.eq.s32.totalorder %v1353_v44, %v368_v15  ;;  %vm387_vm9 = vcmp.eq.s32.totalorder %v1356_v54, %v368_v15  ;;  %v413_v15 = vsel %vm389_vm15, %v1162_v19, 0.0 }
 0x23d   :  { %v880_v31 = vpop.eup %879  ;;  %646 = vadd.xlane.f32.xlu0 %v645_v12  ;;  %v410_v29 = vsel %vm386_vm8, %v1138_v6, 0.0  ;;  %v411_v52 = vsel %vm387_vm9, %v1146_v10, 0.0  ;;  %v408_v6 = vsel %vm384_vm10, %v1191_v33, 0.0  ;;  %v409_v10 = vsel %vm385_vm11, %v1202_v39, 0.0  ;;  %v377_v18 = vpop.permute.xlu0 %376 }
 0x23e   :  { %v882_v32 = vpop.eup %881  ;;  %v430_v62 = vadd.f32 %v411_v52, %v410_v29  ;;  %v427_v60 = vadd.f32 %v409_v10, %v408_v6  ;;  %v412_v12 = vsel %vm388_vm14, %v1152_v14, 0.0  ;;  %vm392_vm0 = vcmp.eq.s32.totalorder %v1353_v44, %v377_v18 }
 0x23f   :  { %v636_v37 = vadd.f32 %v882_v32, %v880_v31  ;;  %v374_v9 = vpop.permute.xlu1 %373  ;;  %vm393_vm2 = vcmp.eq.s32.totalorder %v1356_v54, %v377_v18 }
 0x240   :  { %vm390_vm12 = vcmp.eq.s32.totalorder %v1353_v44, %v374_v9  ;;  %vm391_vm13 = vcmp.eq.s32.totalorder %v1356_v54, %v374_v9  ;;  %v417_v33 = vsel %vm393_vm2, %v1206_v40, 0.0 }
 0x241   :  { %v884_v42 = vpop.eup %883  ;;  %419 = vadd.xlane.f32.xlu0 %v418_v35  ;;  %637 = vadd.xlane.f32.xlu1 %v636_v37  ;;  %v414_v13 = vsel %vm390_vm12, %v1172_v25, 0.0  ;;  %v415_v0 = vsel %vm391_vm13, %v1188_v30, 0.0  ;;  %v433_v25 = vadd.f32 %v413_v15, %v412_v12  ;;  %v416_v30 = vsel %vm392_vm0, %v1198_v36, 0.0 }
 0x242   :  { %v886_v5 = vpop.eup %885  ;;  %v436_v11 = vadd.f32 %v415_v0, %v414_v13  ;;  %v439_v39 = vadd.f32 %v417_v33, %v416_v30 }
 0x243   :  { %v648_v45 = vadd.f32 %v886_v5, %v884_v42 }
 0x245   :  { %425 = vadd.xlane.f32.xlu0 %v424_v43  ;;  %649 = vadd.xlane.f32.xlu1 %v648_v45 }
 0x249   :  { %431 = vadd.xlane.f32.xlu0 %v430_v62  ;;  %422 = vadd.xlane.f32.xlu1 %v421_v63 }
 0x24d   :  { %437 = vadd.xlane.f32.xlu0 %v436_v11  ;;  %428 = vadd.xlane.f32.xlu1 %v427_v60 }
 0x251   :  { %434 = vadd.xlane.f32.xlu1 %v433_v25 }
 0x255   :  { %440 = vadd.xlane.f32.xlu1 %v439_v39 }
 0x256   :  { %930 = shalt.err (!%p927_p4)
}
 0x257   :  { %s945_s14 = smov 256   ;;  %s946_s15 = smov 16   ;;  %v515_v14 = vmul.f32 1.442695, %v507_v51  ;;  %v523_v19 = vmul.f32 1.442695, %v511_v61 }
 0x258   :  { %757 = dma.vmem_to_hbm [thread:$0]  %s752_s12, 2048, %s1501_s4, [#allocation6], %s945_s14, %s945_s14, %s946_s15   ;;  %v517_v36 = vmul.f32 1.442695, %v508_v7  ;;  %v525_v40 = vmul.f32 1.442695, %v512_v59 }
 0x259   :  { %887 = vpow2.f32 %v515_v14  ;;  %v519_v46 = vmul.f32 1.442695, %v509_v8  ;;  %v499_v51 = vld [vmem:[#allocation3] sm:$0xff]  ;;  %v527_v50 = vmul.f32 1.442695, %v513_v23  ;;  %v500_v2 = vld [vmem:[#allocation3 + $0x8] sm:$0xff] }
 0x25a   :  { %889 = vpow2.f32 %v523_v19  ;;  %v503_v1 = vld [vmem:[#allocation3 + $0x20] sm:$0xff]  ;;  %v521_v49 = vmul.f32 1.442695, %v510_v21  ;;  %v529_v4 = vmul.f32 1.442695, %v514_v28  ;;  %v504_v3 = vld [vmem:[#allocation3 + $0x28] sm:$0xff] }
 0x25b   :  { %891 = vpow2.f32 %v517_v36  ;;  %v501_v31 = vld [vmem:[#allocation3 + $0x10] sm:$0xff]  ;;  %v502_v9 = vld [vmem:[#allocation3 + $0x18] sm:$0xff]  ;;  %v394_v47 = vld [vmem:[#allocation4] sm:$0xff] }
 0x25c   :  { %893 = vpow2.f32 %v525_v40  ;;  %v505_v35 = vld [vmem:[#allocation3 + $0x30] sm:$0xff]  ;;  %v506_v63 = vld [vmem:[#allocation3 + $0x38] sm:$0xff]  ;;  %v678_v10 = vld [vmem:[#allocation2] sm:$0xff] }
 0x25d   :  { %895 = vpow2.f32 %v519_v46  ;;  %v396_v11 = vld [vmem:[#allocation4 + $0x10] sm:$0xff]  ;;  %v682_v33 = vld [vmem:[#allocation2 + $0x20] sm:$0xff]  ;;  %v395_v40 = vld [vmem:[#allocation4 + $0x8] sm:$0xff] }
 0x25e   :  { %897 = vpow2.f32 %v527_v50  ;;  %v398_v46 = vld [vmem:[#allocation4 + $0x20] sm:$0xff] }
 0x25f   :  { %899 = vpow2.f32 %v521_v49  ;;  %v397_v49 = vld [vmem:[#allocation4 + $0x18] sm:$0xff] }
 0x260   :  { %901 = vpow2.f32 %v529_v4 }
 0x266   :  { %v888_v48 = vpop.eup %887 }
 0x267   :  { %v531_v56 = vmul.f32 %v888_v48, %v499_v51  ;;  %v890_v57 = vpop.eup %889 }
 0x268   :  { %v535_v55 = vmul.f32 %v890_v57, %v503_v1  ;;  %v892_v58 = vpop.eup %891  ;;  %v679_v57 = vld [vmem:[#allocation2 + $0x8] sm:$0xff] }
 0x269   :  { %v532_v17 = vmul.f32 %v892_v58, %v500_v2  ;;  %v894_v23 = vpop.eup %893 }
 0x26a   :  { %v536_v54 = vmul.f32 %v894_v23, %v504_v3  ;;  %v896_v24 = vpop.eup %895  ;;  %v683_v23 = vld [vmem:[#allocation2 + $0x28] sm:$0xff] }
 0x26b   :  { %v533_v27 = vmul.f32 %v896_v24, %v501_v31  ;;  %v898_v28 = vpop.eup %897  ;;  %v399_v24 = vld [vmem:[#allocation4 + $0x28] sm:$0xff] }
 0x26c   :  { %v537_v41 = vmul.f32 %v898_v28, %v505_v35  ;;  %v900_v42 = vpop.eup %899 }
 0x26d   :  { %v902_v22 = vpop.eup %901  ;;  %v534_v29 = vmul.f32 %v900_v42, %v502_v9 }
 0x26e   :  { %v538_v12 = vmul.f32 %v902_v22, %v506_v63 }
 0x2b2   :  { %v629_v61 = vpop.xlane.xlu1 %628 }
 0x2b3   :  { %v651_v7 = vadd.f32 %v629_v61, %v531_v56 }
 0x2b5   :  { %659 = vst.msk [vmem:[#allocation3] sm:$0xff] %vm69_vm1, %v651_v7 }
 0x2b6   :  { %v641_v59 = vpop.xlane.xlu0 %640 }
 0x2b7   :  { %v655_v8 = vadd.f32 %v641_v59, %v535_v55  ;;  %v400_v59 = vld [vmem:[#allocation4 + $0x30] sm:$0xff] }
 0x2b9   :  { %663 = vst.msk [vmem:[#allocation3 + $0x20] sm:$0xff] %vm69_vm1, %v655_v8 }
 0x2ba   :  { %v632_v44 = vpop.xlane.xlu0 %631 }
 0x2bb   :  { %v652_v16 = vadd.f32 %v632_v44, %v532_v17 }
 0x2bc   :  { %v686_v21 = vld [vmem:[#allocation3] sm:$0xff] }
 0x2bd   :  { %903 = vlog2.f32 %v686_v21  ;;  %660 = vst.msk [vmem:[#allocation3 + $0x8] sm:$0xff] %vm69_vm1, %v652_v16 }
 0x2be   :  { %v644_v26 = vpop.xlane.xlu1 %643 }
 0x2bf   :  { %v656_v32 = vadd.f32 %v644_v26, %v536_v54 }
 0x2c0   :  { %v690_v20 = vld [vmem:[#allocation3 + $0x20] sm:$0xff] }
 0x2c1   :  { %905 = vlog2.f32 %v690_v20  ;;  %664 = vst.msk [vmem:[#allocation3 + $0x28] sm:$0xff] %vm69_vm1, %v656_v32  ;;  %v680_v20 = vld [vmem:[#allocation2 + $0x10] sm:$0xff] }
 0x2c2   :  { %v635_v34 = vpop.xlane.xlu0 %634 }
 0x2c3   :  { %v653_v37 = vadd.f32 %v635_v34, %v533_v27 }
 0x2c4   :  { %v687_v38 = vld [vmem:[#allocation3 + $0x8] sm:$0xff] }
 0x2c5   :  { %907 = vlog2.f32 %v687_v38  ;;  %661 = vst.msk [vmem:[#allocation3 + $0x10] sm:$0xff] %vm69_vm1, %v653_v37  ;;  %v401_v37 = vld [vmem:[#allocation4 + $0x38] sm:$0xff] }
 0x2c6   :  { %v647_v5 = vpop.xlane.xlu0 %646 }
 0x2c7   :  { %v657_v43 = vadd.f32 %v647_v5, %v537_v41 }
 0x2c8   :  { %v691_v45 = vld [vmem:[#allocation3 + $0x28] sm:$0xff] }
 0x2c9   :  { %909 = vlog2.f32 %v691_v45  ;;  %665 = vst.msk [vmem:[#allocation3 + $0x30] sm:$0xff] %vm69_vm1, %v657_v43  ;;  %v684_v43 = vld [vmem:[#allocation2 + $0x30] sm:$0xff] }
 0x2ca   :  { %v904_v52 = vpop.eup %903  ;;  %v638_v53 = vpop.xlane.xlu1 %637 }
 0x2cb   :  { %v420_v62 = vpop.xlane.xlu0 %419  ;;  %v695_v13 = vmul.f32 0.6931472, %v904_v52  ;;  %v654_v0 = vadd.f32 %v638_v53, %v534_v29  ;;  %v681_v53 = vld [vmem:[#allocation2 + $0x18] sm:$0xff] }
 0x2cc   :  { %v442_v6 = vadd.f32 %v420_v62, %v394_v47  ;;  %v688_v18 = vld [vmem:[#allocation3 + $0x10] sm:$0xff] }
 0x2cd   :  { %v710_v60 = vadd.f32 %v695_v13, %v678_v10  ;;  %911 = vlog2.f32 %v688_v18  ;;  %662 = vst.msk [vmem:[#allocation3 + $0x18] sm:$0xff] %vm69_vm1, %v654_v0 }
 0x2ce   :  { %451 = vst.msk [vmem:[#allocation4] sm:$0xff] %vm69_vm1, %v442_v6  ;;  %v906_v15 = vpop.eup %905  ;;  %v650_v25 = vpop.xlane.xlu1 %649  ;;  %v685_v6 = vld [vmem:[#allocation2 + $0x38] sm:$0xff] }
 0x2cf   :  { %v426_v30 = vpop.xlane.xlu0 %425  ;;  %718 = vst.msk [vmem:[%s1502_s5] sm:$0xff] %vm69_vm1, %v710_v60  ;;  %v703_v39 = vmul.f32 0.6931472, %v906_v15  ;;  %v658_v14 = vadd.f32 %v650_v25, %v538_v12 }
 0x2d0   :  { %v444_v19 = vadd.f32 %v426_v30, %v396_v11  ;;  %v692_v36 = vld [vmem:[#allocation3 + $0x30] sm:$0xff] }
 0x2d1   :  { %v714_v48 = vadd.f32 %v703_v39, %v682_v33  ;;  %913 = vlog2.f32 %v692_v36  ;;  %666 = vst.msk [vmem:[#allocation3 + $0x38] sm:$0xff] %vm69_vm1, %v658_v14 }
 0x2d2   :  { %453 = vst.msk [vmem:[#allocation4 + $0x10] sm:$0xff] %vm69_vm1, %v444_v19  ;;  %v908_v51 = vpop.eup %907  ;;  %v423_v50 = vpop.xlane.xlu1 %422 }
 0x2d3   :  { %v432_v56 = vpop.xlane.xlu0 %431  ;;  %722 = vst.msk [vmem:[%s1502_s5 + $0x20] sm:$0xff] %vm69_vm1, %v714_v48  ;;  %v697_v61 = vmul.f32 0.6931472, %v908_v51  ;;  %v443_v1 = vadd.f32 %v423_v50, %v395_v40 }
 0x2d4   :  { %v446_v7 = vadd.f32 %v432_v56, %v398_v46  ;;  %v689_v55 = vld [vmem:[#allocation3 + $0x18] sm:$0xff] }
 0x2d5   :  { %v726_v58 = vld [vmem:[#allocation4] sm:$0xff]  ;;  %v711_v2 = vadd.f32 %v697_v61, %v679_v57  ;;  %915 = vlog2.f32 %v689_v55  ;;  %452 = vst.msk [vmem:[#allocation4 + $0x8] sm:$0xff] %vm69_vm1, %v443_v1 }
 0x2d6   :  { %734 = vst.msk [vmem:[%s1503_s6] sm:$0xff] %vm69_vm1, %v726_v58  ;;  %455 = vst.msk [vmem:[#allocation4 + $0x20] sm:$0xff] %vm69_vm1, %v446_v7  ;;  %v910_v8 = vpop.eup %909  ;;  %v429_v4 = vpop.xlane.xlu1 %428 }
 0x2d7   :  { %v438_v17 = vpop.xlane.xlu0 %437  ;;  %719 = vst.msk [vmem:[%s1502_s5 + $0x8] sm:$0xff] %vm69_vm1, %v711_v2  ;;  %v705_v44 = vmul.f32 0.6931472, %v910_v8  ;;  %v445_v3 = vadd.f32 %v429_v4, %v397_v49 }
 0x2d8   :  { %v448_v16 = vadd.f32 %v438_v17, %v400_v59  ;;  %v693_v21 = vld [vmem:[#allocation3 + $0x38] sm:$0xff] }
 0x2d9   :  { %v728_v54 = vld [vmem:[#allocation4 + $0x10] sm:$0xff]  ;;  %v715_v26 = vadd.f32 %v705_v44, %v683_v23  ;;  %917 = vlog2.f32 %v693_v21  ;;  %454 = vst.msk [vmem:[#allocation4 + $0x18] sm:$0xff] %vm69_vm1, %v445_v3 }
 0x2da   :  { %736 = vst.msk [vmem:[%s1503_s6 + $0x10] sm:$0xff] %vm69_vm1, %v728_v54  ;;  %457 = vst.msk [vmem:[#allocation4 + $0x30] sm:$0xff] %vm69_vm1, %v448_v16  ;;  %v912_v31 = vpop.eup %911  ;;  %v435_v32 = vpop.xlane.xlu1 %434 }
 0x2db   :  { %723 = vst.msk [vmem:[%s1502_s5 + $0x28] sm:$0xff] %vm69_vm1, %v715_v26  ;;  %v699_v27 = vmul.f32 0.6931472, %v912_v31  ;;  %v447_v28 = vadd.f32 %v435_v32, %v399_v24 }
 0x2dc   :  { %v727_v34 = vld [vmem:[#allocation4 + $0x8] sm:$0xff] }
 0x2dd   :  { %v730_v35 = vld [vmem:[#allocation4 + $0x20] sm:$0xff]  ;;  %v712_v38 = vadd.f32 %v699_v27, %v680_v20  ;;  %735 = vst.msk [vmem:[%s1503_s6 + $0x8] sm:$0xff] %vm69_vm1, %v727_v34  ;;  %456 = vst.msk [vmem:[#allocation4 + $0x28] sm:$0xff] %vm69_vm1, %v447_v28 }
 0x2de   :  { %738 = vst.msk [vmem:[%s1503_s6 + $0x20] sm:$0xff] %vm69_vm1, %v730_v35  ;;  %v914_v41 = vpop.eup %913  ;;  %v441_v42 = vpop.xlane.xlu1 %440 }
 0x2df   :  { %720 = vst.msk [vmem:[%s1502_s5 + $0x10] sm:$0xff] %vm69_vm1, %v712_v38  ;;  %v707_v5 = vmul.f32 0.6931472, %v914_v41  ;;  %v449_v9 = vadd.f32 %v441_v42, %v401_v37 }
 0x2e0   :  { %v729_v45 = vld [vmem:[#allocation4 + $0x18] sm:$0xff] }
 0x2e1   :  { %v732_v47 = vld [vmem:[#allocation4 + $0x30] sm:$0xff]  ;;  %v716_v22 = vadd.f32 %v707_v5, %v684_v43  ;;  %737 = vst.msk [vmem:[%s1503_s6 + $0x18] sm:$0xff] %vm69_vm1, %v729_v45  ;;  %458 = vst.msk [vmem:[#allocation4 + $0x38] sm:$0xff] %vm69_vm1, %v449_v9 }
 0x2e2   :  { %740 = vst.msk [vmem:[%s1503_s6 + $0x30] sm:$0xff] %vm69_vm1, %v732_v47  ;;  %v916_v29 = vpop.eup %915 }
 0x2e3   :  { %724 = vst.msk [vmem:[%s1502_s5 + $0x30] sm:$0xff] %vm69_vm1, %v716_v22  ;;  %v701_v52 = vmul.f32 0.6931472, %v916_v29 }
 0x2e4   :  { %v731_v62 = vld [vmem:[#allocation4 + $0x28] sm:$0xff] }
 0x2e5   :  { %v713_v63 = vadd.f32 %v701_v52, %v681_v53  ;;  %739 = vst.msk [vmem:[%s1503_s6 + $0x28] sm:$0xff] %vm69_vm1, %v731_v62 }
 0x2e6   :  { %v918_v13 = vpop.eup %917 }
 0x2e7   :  { %721 = vst.msk [vmem:[%s1502_s5 + $0x18] sm:$0xff] %vm69_vm1, %v713_v63  ;;  %v709_v0 = vmul.f32 0.6931472, %v918_v13 }
 0x2e8   :  { %v733_v10 = vld [vmem:[#allocation4 + $0x38] sm:$0xff] }
 0x2e9   :  { %v717_v18 = vadd.f32 %v709_v0, %v685_v6  ;;  %741 = vst.msk [vmem:[%s1503_s6 + $0x38] sm:$0xff] %vm69_vm1, %v733_v10 }
 0x2eb   :  { %725 = vst.msk [vmem:[%s1502_s5 + $0x38] sm:$0xff] %vm69_vm1, %v717_v18 }
 0x2ec   :  { %939 = dma.done.wait [#allocation6], 2048  }
 0x2ed   :  { %940 = vsyncadd [#allocation6], 4294965248 }
 0x2ee   :  { %769 = vsyncpa [#allocation6], 1 }

</bundles_post_ra>
